<compile_context>
chip_gen: v7x
topology: tpu7x:2x2x1
jax: 0.10.0
libtpu: 0.0.40
codegen_flags: <defaults>
</compile_context>

<pallas_src>
import functools
import math

import jax
import jax.numpy as jnp
from jax.experimental import pallas as pl
from jax.experimental.pallas import tpu as pltpu


def _scar_softplus_kernel(x_ref, o_ref, *, threshold):
    # Upcast once; numerically stable softplus: max(x,0) + log1p(exp(-|x|)).
    x = x_ref[...].astype(jnp.float32)
    sp = jnp.maximum(x, 0.0) + jnp.log1p(jnp.exp(-jnp.abs(x)))
    o_ref[...] = jnp.maximum(sp - threshold, 0.0).astype(o_ref.dtype)


def _round_up(a, b):
    return ((a + b - 1) // b) * b


def _default_block_bytes():
    # Per-generation block budget: per-step overhead matters more the faster
    # HBM gets, but v7x only has 64 MiB physical VMEM, so cap at ~6 MiB.
    try:
        kind = jax.devices()[0].device_kind.lower()
    except Exception:
        kind = ""
    if "v5 lite" in kind or "v5lite" in kind or "v5e" in kind:
        return 3 * 1024 * 1024
    return 6 * 1024 * 1024


def scar_softplus(x, sparsity=0.9, block_bytes=None):
    """Customized softplus with sparsity-dependent threshold (scvi scar)."""
    orig_shape = x.shape
    orig_dtype = x.dtype
    total = int(x.size)

    if total == 0:
        return x

    if block_bytes is None:
        block_bytes = _default_block_bytes()

    # threshold = softplus(-(1 - sparsity) * 10.0): compile-time constant.
    # NOTE: `sparsity` must be a static Python scalar (as in the nn.Module).
    t = -(1.0 - sparsity) * 10.0
    threshold = float(max(t, 0.0) + math.log1p(math.exp(-abs(t))))

    itemsize = jnp.dtype(orig_dtype).itemsize
    # sublane packing: 8 rows for 32-bit, 16 for 16-bit, 32 for 8-bit dtypes
    pack = max(8, 32 // max(int(itemsize), 1))

    # Lane-dense slab width: largest multiple of 128 that divides `total`,
    # so we avoid jnp.pad + output slice (each is a full extra HBM pass).
    lanes = None
    for cand in (1024, 512, 256, 128):
        if total % cand == 0:
            lanes = cand
            break
    if lanes is None:
        # TODO(synk): replace this remainder pad with an in-kernel masked tail
        # (scalar-prefetch `total`) to keep odd sizes at exactly 1R + 1W.
        lanes = 128
        padded_total = _round_up(total, lanes)
    else:
        padded_total = total

    nrows = padded_total // lanes

    # Rows per block from the byte budget (pack-aligned).
    budget_rows = max(pack, (block_bytes // (lanes * itemsize)) // pack * pack)
    # Keep >= 4 grid steps when rows allow, so both v7x TCs get parallel work.
    target_rows = max(pack, _round_up(pl.cdiv(nrows, 4), pack))
    block_rows = min(budget_rows, target_rows)

    flat = x.reshape(-1)
    if padded_total > total:
        flat = jnp.pad(flat, (0, padded_total - total))
    x2d = flat.reshape(nrows, lanes)

    # Partial last block (if any) is handled by Pallas: block shape stays
    # (8,128)-aligned and out-of-bounds writes are masked on writeback.
    grid = (pl.cdiv(nrows, block_rows),)
    blk = (block_rows, lanes)

    kernel = functools.partial(_scar_softplus_kernel, threshold=threshold)

    out2d = pl.pallas_call(
        kernel,
        out_shape=jax.ShapeDtypeStruct((nrows, lanes), orig_dtype),
        grid_spec=pltpu.PrefetchScalarGridSpec(
            num_scalar_prefetch=0,
            grid=grid,
            in_specs=[pl.BlockSpec(blk, lambda i: (i, 0))],
            out_specs=pl.BlockSpec(blk, lambda i: (i, 0)),
        ),
        compiler_params=pltpu.CompilerParams(
            dimension_semantics=("parallel",),
            # in + out, double-buffered = 4 * block_bytes; leave headroom for
            # Mosaic internal scratch. Fits v7x's 64 MiB physical VMEM.
            vmem_limit_bytes=max(
                32 * 1024 * 1024, 4 * block_bytes + 8 * 1024 * 1024
            ),
        ),
    )(x2d)

    out_flat = out2d.reshape(-1)
    if padded_total > total:
        out_flat = out_flat[:total]
    return out_flat.reshape(orig_shape)


def _reference(x, sparsity=0.9):
    var_sp = jax.nn.softplus(x.astype(jnp.float32))
    threshold = jax.nn.softplus(jnp.asarray(-(1.0 - sparsity) * 10.0, jnp.float32))
    var_sp = var_sp - threshold
    return jnp.where(var_sp <= 0.0, 0.0, var_sp).astype(x.dtype)


if __name__ == "__main__":
    key = jax.random.PRNGKey(0)

    # small NCHW-like input consistent with a generic activation module
    x = jax.random.normal(key, (2, 4, 16, 16), dtype=jnp.float32) * 3.0
    out = jax.block_until_ready(scar_softplus(x, sparsity=0.9))
    ref = _reference(x, sparsity=0.9)
    assert out.shape == x.shape and out.dtype == x.dtype
    assert jnp.allclose(out, ref, atol=1e-5, rtol=1e-5), (
        float(jnp.max(jnp.abs(out - ref)))
    )

    # multi-block, lanes-divisible path (no pad, grid >= 4)
    x1 = jax.random.normal(jax.random.PRNGKey(1), (4, 8, 1024), jnp.float32) * 2.0
    out1 = jax.block_until_ready(scar_softplus(x1, sparsity=0.9))
    assert jnp.allclose(out1, _reference(x1, sparsity=0.9), atol=1e-5, rtol=1e-5)

    # odd-sized input: exercises the 128-lane remainder-pad fallback
    x2 = jax.random.normal(jax.random.PRNGKey(2), (3, 5, 37, 129), jnp.float32) * 2.0
    out2 = jax.block_until_ready(scar_softplus(x2, sparsity=0.9))
    assert jnp.allclose(out2, _reference(x2, sparsity=0.9), atol=1e-5, rtol=1e-5)

    # bf16 round-trip (compute in f32, cast back on store)
    x3 = (jax.random.normal(jax.random.PRNGKey(3), (4, 8, 1024)) * 2.0).astype(
        jnp.bfloat16
    )
    out3 = jax.block_until_ready(scar_softplus(x3, sparsity=0.9))
    ref3 = _reference(x3, sparsity=0.9)
    assert out3.dtype == jnp.bfloat16
    assert jnp.allclose(
        out3.astype(jnp.float32), ref3.astype(jnp.float32), atol=2e-2, rtol=2e-2
    )

    print("KERNEL_OK")
</pallas_src>

<mosaic_0001>
module attributes {stable_mosaic.version = 11 : i64} {
  func.func @_scar_softplus_kernel(%arg0: i32, %arg1: memref<8x1024xf32, #tpu.memory_space<vmem>>, %arg2: memref<8x1024xf32, #tpu.memory_space<vmem>>) attributes {dimension_semantics = [#tpu.dimension_semantics<parallel>], iteration_bounds = array<i64: 1>, scalar_prefetch = 0 : i64, scratch_operands = 0 : i64, tpu.core_type = #tpu.core_type<tc>, window_params = [{transform_indices = @transform_0, window_bounds = array<i64: 8, 1024>}, {transform_indices = @transform_1, window_bounds = array<i64: 8, 1024>}]} {
    %c0 = arith.constant 0 : index
    %c0_0 = arith.constant 0 : index
    %0 = vector.load %arg1[%c0, %c0_0] : memref<8x1024xf32, #tpu.memory_space<vmem>>, vector<8x1024xf32>
    %cst = arith.constant 0.000000e+00 : f32
    %1 = vector.broadcast %cst : f32 to vector<8x1024xf32>
    %2 = arith.maximumf %0, %1 : vector<8x1024xf32>
    %3 = math.absf %0 : vector<8x1024xf32>
    %cst_1 = arith.constant 0.000000e+00 : f32
    %4 = vector.broadcast %cst_1 : f32 to vector<8x1024xf32>
    %5 = arith.subf %4, %3 : vector<8x1024xf32>
    %6 = math.exp %5 : vector<8x1024xf32>
    %7 = math.log1p %6 : vector<8x1024xf32>
    %8 = arith.addf %2, %7 : vector<8x1024xf32>
    %cst_2 = arith.constant 0.313261688 : f32
    %9 = vector.broadcast %cst_2 : f32 to vector<8x1024xf32>
    %10 = arith.subf %8, %9 : vector<8x1024xf32>
    %cst_3 = arith.constant 0.000000e+00 : f32
    %11 = vector.broadcast %cst_3 : f32 to vector<8x1024xf32>
    %12 = arith.maximumf %10, %11 : vector<8x1024xf32>
    %c0_4 = arith.constant 0 : index
    %c0_5 = arith.constant 0 : index
    %13 = vector.load %arg2[%c0_4, %c0_5] : memref<8x1024xf32, #tpu.memory_space<vmem>>, vector<8x1024xf32>
    tpu.vector_store %arg2[%c0_4, %c0_5], %12 {strides = array<i32>} : memref<8x1024xf32, #tpu.memory_space<vmem>>, vector<8x1024xf32>,
    return
  }
  func.func @transform_0(%arg0: i32) -> (i32, i32) {
    %c0_i32 = arith.constant 0 : i32
    %c0_i32_0 = arith.constant 0 : i32
    return %arg0, %c0_i32 : i32, i32
  }
  func.func @transform_1(%arg0: i32) -> (i32, i32) {
    %c0_i32 = arith.constant 0 : i32
    %c0_i32_0 = arith.constant 0 : i32
    return %arg0, %c0_i32 : i32, i32
  }
}

</mosaic_0001>

<bundles_post_ra>
// kernel: tpu_custom_call.1
= control target key start
LH: loop header
LB: loop body
LE: loop exit
PB: predicated region body
PF: predicated region fallthrough
CT: control target
= control target key end

     0   :  { %6 = vsyncpa [#allocation3], 0  ;;  %s426_s0 = inlined_call_operand.hbm [shape: f32[2,1024], index: 0, kind: input, shape index: {}]   ;;  %s427_s1 = inlined_call_operand.hbm [shape: f32[2,1024], index: 1, kind: output, shape index: {}]  }
   0x1   :  { %7 = vsyncpa [#allocation4], 0 }
   0x2   :  { %12 = vsyncadd [#allocation3], 768  ;;  %s284_s6 = smov [#allocation2]   ;;  %s236_s10 = scalar_lea.hbm %s426_s0, 256 }
   0x3   :  { %s13_s7 = sshll.u32 %s284_s6, 4  ;;  %p237_p0 = scmp.ne.s32.totalorder %s426_s0, %s236_s10  ;;  %s14_s7 = int_to_ptr.vmem [resolvable:$true] %s13_s7 }
   0x4   :  { %p240_p1 = scmp.lt.u32.totalorder %s236_s10, %s426_s0 }
   0x6   :  { %p242_p2 = pnand %p240_p1, %p237_p0 }
   0x8   :  { %245 = shalt.err (!%p242_p2)
}
   0x9   :  { %s246_s15 = scalar_lea.vmem %s14_s7, 256  ;;  %s250_s16 = scalar_lea.vmem %s14_s7, 1024 }
   0xa   :  { %p247_p3 = scmp.ne.s32.totalorder %s14_s7, %s246_s15  ;;  %p251_p4 = scmp.lt.s32.totalorder %s14_s7, %s14_s7 }
   0xb   :  { %p252_p5 = scmp.lt.s32.totalorder %s250_s16, %s246_s15 }
   0xd   :  { %p253_p6 = por %p252_p5, %p251_p4 }
   0xf   :  { %p254_p7 = pnand %p253_p6, %p247_p3 }
  0x11   :  { %257 = shalt.err (!%p254_p7)
}
  0x12   :  { %s285_s17 = smov 256   ;;  %s286_s18 = smov 16  }
  0x13   :  { %19 = dma.hbm_to_vmem [thread:$0]  %s426_s0, 256, %s14_s7, [#allocation3], %s285_s17, %s285_s17, %s286_s18  }
  0x14   :  { %280 = dma.done.wait [#allocation3], 1024  }
  0x15   :  { %281 = vsyncadd [#allocation3], 4294966272  ;;  %v313_v0 = vld [vmem:[#allocation2] sm:$0xff]  ;;  %v315_v1 = vld [vmem:[#allocation2 + $0x8] sm:$0xff] }
  0x16   :  { %v317_v2 = vld [vmem:[#allocation2 + $0x10] sm:$0xff]  ;;  %v39_v3 = vand.u32 2147483647, %v313_v0  ;;  %v40_v4 = vand.u32 2147483647, %v315_v1  ;;  %v322_v6 = vld [vmem:[#allocation2 + $0x18] sm:$0xff] }
  0x17   :  { %v41_v5 = vand.u32 2147483647, %v317_v2  ;;  %v324_v7 = vld [vmem:[#allocation2 + $0x20] sm:$0xff]  ;;  %v42_v10 = vand.u32 2147483647, %v322_v6  ;;  %v327_v11 = vld [vmem:[#allocation2 + $0x28] sm:$0xff] }
  0x18   :  { %v47_v8 = vsub.f32 0.0, %v39_v3  ;;  %v48_v9 = vsub.f32 0.0, %v40_v4  ;;  %v43_v13 = vand.u32 2147483647, %v324_v7  ;;  %v330_v14 = vld [vmem:[#allocation2 + $0x30] sm:$0xff]  ;;  %v332_v15 = vld [vmem:[#allocation2 + $0x38] sm:$0xff] }
  0x19   :  { %v49_v12 = vsub.f32 0.0, %v41_v5  ;;  %v50_v18 = vsub.f32 0.0, %v42_v10  ;;  %v44_v21 = vand.u32 2147483647, %v327_v11  ;;  %v45_v23 = vand.u32 2147483647, %v330_v14 }
  0x1a   :  { %v55_v16 = vmul.f32 1.442695, %v47_v8  ;;  %v57_v17 = vmul.f32 1.442695, %v48_v9  ;;  %v51_v20 = vsub.f32 0.0, %v43_v13  ;;  %v31_v38 = vmax.f32 %v313_v0, 0.0 }
  0x1b   :  { %v59_v19 = vmul.f32 1.442695, %v49_v12  ;;  %v61_v22 = vmul.f32 1.442695, %v50_v18  ;;  %v46_v24 = vand.u32 2147483647, %v332_v15 }
  0x1c   :  { %204 = vpow2.f32 %v55_v16  ;;  %v63_v25 = vmul.f32 1.442695, %v51_v20  ;;  %v52_v26 = vsub.f32 0.0, %v44_v21  ;;  %v53_v27 = vsub.f32 0.0, %v45_v23 }
  0x1d   :  { %206 = vpow2.f32 %v57_v17  ;;  %v54_v28 = vsub.f32 0.0, %v46_v24  ;;  %v32_v43 = vmax.f32 %v315_v1, 0.0  ;;  %v33_v45 = vmax.f32 %v317_v2, 0.0 }
  0x1e   :  { %208 = vpow2.f32 %v59_v19  ;;  %v65_v29 = vmul.f32 1.442695, %v52_v26  ;;  %v67_v30 = vmul.f32 1.442695, %v53_v27  ;;  %v34_v50 = vmax.f32 %v322_v6, 0.0 }
  0x1f   :  { %210 = vpow2.f32 %v61_v22  ;;  %v69_v31 = vmul.f32 1.442695, %v54_v28  ;;  %v35_v51 = vmax.f32 %v324_v7, 0.0  ;;  %v36_v55 = vmax.f32 %v327_v11, 0.0 }
  0x20   :  { %212 = vpow2.f32 %v63_v25  ;;  %v37_v59 = vmax.f32 %v330_v14, 0.0 }
  0x21   :  { %214 = vpow2.f32 %v65_v29 }
  0x22   :  { %216 = vpow2.f32 %v67_v30 }
  0x23   :  { %218 = vpow2.f32 %v69_v31 }
  0x26   :  { %v205_v32 = vpop.eup %204 }
  0x27   :  { %v207_v33 = vpop.eup %206  ;;  %v71_v34 = vadd.f32 1.0, %v205_v32  ;;  %v74_v41 = vmul.f32 -0.5, %v205_v32  ;;  %v77_v42 = vand.u32 2147483647, %v205_v32 }
  0x28   :  { %v209_v35 = vpop.eup %208  ;;  %v80_v36 = vadd.f32 1.0, %v207_v33  ;;  %v83_v44 = vmul.f32 -0.5, %v207_v33  ;;  %v86_v48 = vand.u32 2147483647, %v207_v33 }
  0x29   :  { %v211_v37 = vpop.eup %210  ;;  %220 = vlog2.f32 %v71_v34  ;;  %v89_v39 = vadd.f32 1.0, %v209_v35  ;;  %v92_v49 = vmul.f32 -0.5, %v209_v35  ;;  %v75_v56 = vadd.f32 1.0, %v74_v41 }
  0x2a   :  { %v213_v40 = vpop.eup %212  ;;  %222 = vlog2.f32 %v80_v36  ;;  %v98_v46 = vadd.f32 1.0, %v211_v37  ;;  %v101_v53 = vmul.f32 -0.5, %v211_v37  ;;  %vm345_vm0 = vcmp.lt.f32.partialorder %v77_v42, 0.0004427343 }
  0x2b   :  { %224 = vlog2.f32 %v89_v39  ;;  %v215_v47 = vpop.eup %214  ;;  %v107_v54 = vadd.f32 1.0, %v213_v40  ;;  %v110_v58 = vmul.f32 -0.5, %v213_v40  ;;  %v84_v61 = vadd.f32 1.0, %v83_v44 }
  0x2c   :  { %v342_v52 = vpop.eup %216  ;;  %226 = vlog2.f32 %v98_v46  ;;  %v95_v62 = vand.u32 2147483647, %v209_v35  ;;  %v116_v63 = vadd.f32 1.0, %v215_v47  ;;  %vm352_vm1 = vcmp.lt.f32.partialorder %v86_v48, 0.0004427343 }
  0x2d   :  { %v350_v60 = vpop.eup %218  ;;  %228 = vlog2.f32 %v107_v54  ;;  %v93_v3 = vadd.f32 1.0, %v92_v49  ;;  %v104_v4 = vand.u32 2147483647, %v211_v37  ;;  %v125_v5 = vadd.f32 1.0, %v342_v52 }
  0x2e   :  { %v102_v8 = vadd.f32 1.0, %v101_v53  ;;  %v113_v9 = vand.u32 2147483647, %v213_v40  ;;  %230 = vlog2.f32 %v116_v63  ;;  %v119_v10 = vmul.f32 -0.5, %v215_v47 }
  0x2f   :  { %v76_v12 = vmul.f32 %v205_v32, %v75_v56  ;;  %v111_v13 = vadd.f32 1.0, %v110_v58  ;;  %232 = vlog2.f32 %v125_v5  ;;  %v134_v16 = vadd.f32 1.0, %v350_v60 }
  0x30   :  { %v85_v18 = vmul.f32 %v207_v33, %v84_v61  ;;  %vm358_vm2 = vcmp.lt.f32.partialorder %v95_v62, 0.0004427343  ;;  %v122_v20 = vand.u32 2147483647, %v215_v47  ;;  %v128_v21 = vmul.f32 -0.5, %v342_v52 }
  0x31   :  { %v94_v24 = vmul.f32 %v209_v35, %v93_v3  ;;  %vm363_vm3 = vcmp.lt.f32.partialorder %v104_v4, 0.0004427343  ;;  %234 = vlog2.f32 %v134_v16  ;;  %v103_v28 = vmul.f32 %v211_v37, %v102_v8 }
  0x32   :  { %vm367_vm4 = vcmp.lt.f32.partialorder %v113_v9, 0.0004427343  ;;  %v120_v30 = vadd.f32 1.0, %v119_v10  ;;  %v112_v33 = vmul.f32 %v213_v40, %v111_v13  ;;  %v137_v34 = vmul.f32 -0.5, %v350_v60 }
  0x33   :  { %v221_v17 = vpop.eup %220  ;;  %vm378_vm5 = vcmp.lt.f32.partialorder %v122_v20, 0.0004427343  ;;  %v129_v41 = vadd.f32 1.0, %v128_v21  ;;  %v131_v40 = vand.u32 2147483647, %v342_v52  ;;  %v38_v10 = vmax.f32 %v332_v15, 0.0 }
  0x34   :  { %v223_v22 = vpop.eup %222  ;;  %v73_v23 = vmul.f32 0.6931472, %v221_v17  ;;  %v140_v53 = vand.u32 2147483647, %v350_v60 }
  0x35   :  { %v225_v26 = vpop.eup %224  ;;  %v82_v27 = vmul.f32 0.6931472, %v223_v22  ;;  %v130_v1 = vmul.f32 %v342_v52, %v129_v41  ;;  %vm395_vm6 = vcmp.lt.f32.partialorder %v131_v40, 0.0004427343 }
  0x36   :  { %v79_v31 = vsel %vm345_vm0, %v76_v12, %v73_v23  ;;  %v91_v32 = vmul.f32 0.6931472, %v225_v26  ;;  %v227_v35 = vpop.eup %226  ;;  %vm141_vm7 = vcmp.lt.f32.partialorder %v140_v53, 0.0004427343 }
  0x37   :  { %v143_v36 = vadd.f32 %v79_v31, %v31_v38  ;;  %v88_v39 = vsel %vm352_vm1, %v85_v18, %v82_v27  ;;  %v100_v46 = vmul.f32 0.6931472, %v227_v35  ;;  %v229_v48 = vpop.eup %228  ;;  %v121_v38 = vmul.f32 %v215_v47, %v120_v30 }
  0x38   :  { %v144_v42 = vadd.f32 %v88_v39, %v32_v43  ;;  %v97_v44 = vsel %vm358_vm2, %v94_v24, %v91_v32  ;;  %v109_v57 = vmul.f32 0.6931472, %v229_v48  ;;  %v138_v43 = vadd.f32 1.0, %v137_v34  ;;  %v231_v58 = vpop.eup %230 }
  0x39   :  { %v192_v49 = vadd.f32 -0.3132617, %v143_v36  ;;  %v145_v0 = vadd.f32 %v97_v44, %v33_v45  ;;  %v106_v56 = vsel %vm363_vm3, %v103_v28, %v100_v46  ;;  %v233_v3 = vpop.eup %232  ;;  %v118_v47 = vmul.f32 0.6931472, %v231_v58 }
  0x3a   :  { %v193_v54 = vadd.f32 -0.3132617, %v144_v42  ;;  %v146_v63 = vadd.f32 %v106_v56, %v34_v50  ;;  %v115_v45 = vsel %vm367_vm4, %v112_v33, %v109_v57  ;;  %v127_v6 = vmul.f32 0.6931472, %v233_v3 }
  0x3b   :  { %v159_v61 = vmax.f32 %v192_v49, 0.0  ;;  %v194_v62 = vadd.f32 -0.3132617, %v145_v0  ;;  %v147_v9 = vadd.f32 %v115_v45, %v35_v51  ;;  %v235_v50 = vpop.eup %234  ;;  %v124_v52 = vsel %vm378_vm5, %v121_v38, %v118_v47 }
  0x3c   :  { %v160_v2 = vmax.f32 %v193_v54, 0.0  ;;  %v195_v8 = vadd.f32 -0.3132617, %v146_v63  ;;  %v139_v12 = vmul.f32 %v350_v60, %v138_v43  ;;  %v148_v17 = vadd.f32 %v124_v52, %v36_v55 }
  0x3d   :  { %167 = vst [vmem:[#allocation5] sm:$0xff] %v159_v61  ;;  %v161_v5 = vmax.f32 %v194_v62, 0.0  ;;  %v196_v16 = vadd.f32 -0.3132617, %v147_v9  ;;  %v133_v7 = vsel %vm395_vm6, %v130_v1, %v127_v6  ;;  %v136_v18 = vmul.f32 0.6931472, %v235_v50 }
  0x3e   :  { %168 = vst [vmem:[#allocation5 + $0x8] sm:$0xff] %v160_v2  ;;  %v162_v13 = vmax.f32 %v195_v8, 0.0  ;;  %v149_v51 = vadd.f32 %v133_v7, %v37_v59  ;;  %v197_v20 = vadd.f32 -0.3132617, %v148_v17 }
  0x3f   :  { %169 = vst [vmem:[#allocation5 + $0x10] sm:$0xff] %v161_v5  ;;  %v163_v19 = vmax.f32 %v196_v16, 0.0  ;;  %v142_v21 = vsel %vm141_vm7, %v139_v12, %v136_v18 }
  0x40   :  { %170 = vst [vmem:[#allocation5 + $0x18] sm:$0xff] %v162_v13  ;;  %v198_v15 = vadd.f32 -0.3132617, %v149_v51  ;;  %v164_v60 = vmax.f32 %v197_v20, 0.0  ;;  %v150_v22 = vadd.f32 %v142_v21, %v38_v10 }
  0x41   :  { %171 = vst [vmem:[#allocation5 + $0x20] sm:$0xff] %v163_v19 }
  0x42   :  { %v165_v23 = vmax.f32 %v198_v15, 0.0  ;;  %172 = vst [vmem:[#allocation5 + $0x28] sm:$0xff] %v164_v60  ;;  %v199_v24 = vadd.f32 -0.3132617, %v150_v22 }
  0x44   :  { %173 = vst [vmem:[#allocation5 + $0x30] sm:$0xff] %v165_v23  ;;  %v166_v11 = vmax.f32 %v199_v24, 0.0 }
  0x46   :  { %174 = vst [vmem:[#allocation5 + $0x38] sm:$0xff] %v166_v11 }
  0x47   :  { %179 = vsyncadd [#allocation4], 768  ;;  %s287_s0 = smov [#allocation5]  }
  0x48   :  { %s180_s21 = sshll.u32 %s287_s0, 4  ;;  %s181_s21 = int_to_ptr.vmem [resolvable:$true] %s180_s21 }
  0x49   :  { %s258_s22 = scalar_lea.vmem %s181_s21, 256  ;;  %s262_s23 = scalar_lea.vmem %s181_s21, 1024 }
  0x4a   :  { %p259_p8 = scmp.ne.s32.totalorder %s181_s21, %s258_s22  ;;  %p263_p9 = scmp.lt.s32.totalorder %s181_s21, %s181_s21 }
  0x4b   :  { %p264_p10 = scmp.lt.s32.totalorder %s262_s23, %s258_s22 }
  0x4d   :  { %p265_p11 = por %p264_p10, %p263_p9 }
  0x4f   :  { %p266_p12 = pnand %p265_p11, %p259_p8 }
  0x51   :  { %269 = shalt.err (!%p266_p12)
}
  0x52   :  { %s270_s26 = scalar_lea.hbm %s427_s1, 256 }
  0x53   :  { %p271_p13 = scmp.ne.s32.totalorder %s427_s1, %s270_s26  ;;  %p274_p0 = scmp.lt.u32.totalorder %s270_s26, %s427_s1 }
  0x55   :  { %p276_p1 = pnand %p274_p0, %p271_p13 }
  0x57   :  { %279 = shalt.err (!%p276_p1)
}
  0x58   :  { %186 = dma.vmem_to_hbm [thread:$0]  %s181_s21, 256, %s427_s1, [#allocation4], %s285_s17, %s285_s17, %s286_s18  }
  0x59   :  { %282 = dma.done.wait [#allocation4], 1024  }
  0x5a   :  { %283 = vsyncadd [#allocation4], 4294966272 }
  0x5b   :  { %190 = vsyncpa [#allocation3], 1 }
  0x5c   :  { %191 = vsyncpa [#allocation4], 1 }

</bundles_post_ra>
